<compile_context>
chip_gen: v7x
topology: tpu7x:2x2x1
jax: 0.10.0
libtpu: 0.0.40
codegen_flags: <defaults>
</compile_context>

<pallas_src>
import functools
import math

import jax
import jax.numpy as jnp
from jax.experimental import pallas as pl
from jax.experimental.pallas import tpu as pltpu

F32 = jnp.float32
BF16 = jnp.bfloat16
BN_EPS = 1e-5


def _rup(x, m):
    return (x + m - 1) // m * m


def _vmem_limit_bytes():
    """Generation-aware scoped-VMEM limit: ~3/4 of physical, capped at 96 MiB
    (v5e/v6e: 128 MiB physical -> 96 MiB; v7x: 64 MiB physical -> 48 MiB)."""
    cap = None
    try:
        info = pltpu.get_tpu_info()
        for name in ("vmem_capacity_bytes", "vmem_bytes", "vmem_size_bytes"):
            v = getattr(info, name, None)
            if v:
                cap = int(v)
                break
    except Exception:
        cap = None
    if cap is None:
        try:
            kind = jax.devices()[0].device_kind.lower()
        except Exception:
            kind = ""
        cap = 64 * 2**20 if "v7" in kind else 128 * 2**20
    return int(min(cap * 3 // 4, 96 * 2**20))


_VMEM_LIMIT = _vmem_limit_bytes()


def _cparams(*sem):
    return pltpu.CompilerParams(dimension_semantics=sem,
                                vmem_limit_bytes=_VMEM_LIMIT)


def _pick_tm(m):
    """Row tile: large exact divisors first (no pad/slice round trip); for
    mid-size row counts split the padded rows into two tiles so the grid has
    >= 2 'parallel' steps (pipelining + v7x megacore); tiny m stays single."""
    for t in (1024, 896, 768, 640, 512, 448, 384, 320, 256):
        if m % t == 0 and m // t >= 2:
            return t
    if m > 2048:
        return 512
    if m >= 256:
        return _rup(m, 16) // 2          # two padded tiles
    return _rup(m, 8)                    # tiny: single tile


def _pick_tn(n):
    """Weight-column tile: pad N up to a multiple of 128 and tile so the
    weight streams in chunks (DMA/compute overlap, megacore-splittable axis);
    small N keeps one full-extent block (no pad waste)."""
    if n < 256:
        return n, n
    np_ = _rup(n, 128)
    tn = 256 if np_ % 256 == 0 else 128
    return np_, tn


def _lane_fold(m, c):
    """Fold factor f with m % f == 0 and (f*c) % 128 == 0: lets elementwise
    kernels see a lane-dense (m/f, f*c) slab when c < 128."""
    if c % 128 == 0:
        return 1
    f = 128 // math.gcd(c, 128)
    return f if m % f == 0 else 1


def _stats_tile(acc):
    """Pack per-channel (sum, sum-of-squares) of an f32 tile into an (8, N)
    slab (row 0 = sum, row 1 = sum of squares)."""
    s = jnp.sum(acc, axis=0, keepdims=True)
    ss = jnp.sum(acc * acc, axis=0, keepdims=True)
    row = jax.lax.broadcasted_iota(jnp.int32, (8, acc.shape[1]), 0)
    return jnp.where(row == 0, s, 0.0) + jnp.where(row == 1, ss, 0.0)


# ---------------------------------------------------------------------------
# Pallas kernels
# ---------------------------------------------------------------------------
def _mm_stats_kernel(a_ref, b_ref, o_ref, st_ref):
    acc = jnp.dot(a_ref[...], b_ref[...], preferred_element_type=jnp.float32)
    o_ref[...] = acc.astype(o_ref.dtype)
    st_ref[...] = _stats_tile(acc)[None]


def _bnact_mm_stats_kernel(a_ref, s_ref, t_ref, b_ref, o_ref, st_ref, *,
                           m_total, tm):
    """Fused prologue: h = SiLU(a*scale + shift) (f32), then MXU matmul with
    f32 accumulation and fused BN-stat epilogue.  Padded rows are zeroed so
    the statistics of the *next* BatchNorm stay exact."""
    h = a_ref[...].astype(jnp.float32) * s_ref[...] + t_ref[...]
    h = h * jax.nn.sigmoid(h)                                # SiLU
    if m_total % tm:
        row = (jax.lax.broadcasted_iota(jnp.int32, h.shape, 0)
               + pl.program_id(0) * tm)
        h = jnp.where(row < m_total, h, 0.0)
    acc = jnp.dot(h.astype(BF16), b_ref[...],
                  preferred_element_type=jnp.float32)
    o_ref[...] = acc.astype(o_ref.dtype)
    st_ref[...] = _stats_tile(acc)[None]


def _bn_act_kernel(x_ref, s_ref, t_ref, o_ref, *, act):
    y = x_ref[...].astype(jnp.float32) * s_ref[...] + t_ref[...]
    if act:
        y = y * jax.nn.sigmoid(y)                            # SiLU
    o_ref[...] = y.astype(o_ref.dtype)


def _bn_act_res_kernel(x_ref, s_ref, t_ref, r_ref, o_ref, *, act):
    y = (x_ref[...].astype(jnp.float32) * s_ref[...] + t_ref[...]
         + r_ref[...].astype(jnp.float32))
    if act:
        y = y * jax.nn.sigmoid(y)                            # SiLU
    o_ref[...] = y.astype(o_ref.dtype)


def _dw_stats_kernel(x_ref, w_ref, o_ref, st_ref):
    taps = x_ref.shape[0]
    acc = x_ref[0].astype(jnp.float32) * w_ref[0]
    for t in range(1, taps):
        acc = acc + x_ref[t].astype(jnp.float32) * w_ref[t]
    o_ref[...] = acc.astype(o_ref.dtype)
    st_ref[...] = _stats_tile(acc)[None]


# ---------------------------------------------------------------------------
# Pallas wrappers
# ---------------------------------------------------------------------------
def _matmul_stats(a, b, scale=None, shift=None):
    """bf16 (M, K) @ (K, N) -> (bf16 (M, N), f32 per-tile BN-stat partials).

    Grid = (row tiles, weight-column tiles): the weight streams in 128/256
    wide chunks (padded to a multiple of 128 when tiled) while the row block
    stays resident, and both axes are 'parallel' (v7x megacore splittable).
    Optionally fuses a per-K-channel scale/shift + SiLU prologue (bn1+act1)."""
    M, K = a.shape
    _, N = b.shape
    tm = _pick_tm(M)
    Mp = _rup(M, tm)
    Np, tn = _pick_tn(N)
    a = a.astype(BF16)
    b = b.astype(BF16)
    if Mp != M:
        a = jnp.pad(a, ((0, Mp - M), (0, 0)))
    if Np != N:
        b = jnp.pad(b, ((0, 0), (0, Np - N)))
    nmt, nnt = Mp // tm, Np // tn

    out_shapes = (jax.ShapeDtypeStruct((Mp, Np), BF16),
                  jax.ShapeDtypeStruct((nmt, 8, Np), F32))
    out_specs = [pl.BlockSpec((tm, tn), lambda i, j: (i, j)),
                 pl.BlockSpec((1, 8, tn), lambda i, j: (i, 0, j))]
    if scale is None:
        kernel = _mm_stats_kernel
        in_specs = [pl.BlockSpec((tm, K), lambda i, j: (i, 0)),
                    pl.BlockSpec((K, tn), lambda i, j: (0, j))]
        args = (a, b)
    else:
        kernel = functools.partial(_bnact_mm_stats_kernel, m_total=M, tm=tm)
        in_specs = [pl.BlockSpec((tm, K), lambda i, j: (i, 0)),
                    pl.BlockSpec((1, K), lambda i, j: (0, 0)),
                    pl.BlockSpec((1, K), lambda i, j: (0, 0)),
                    pl.BlockSpec((K, tn), lambda i, j: (0, j))]
        args = (a, scale[None, :].astype(F32), shift[None, :].astype(F32), b)

    out, stats = pl.pallas_call(
        kernel,
        out_shape=out_shapes,
        grid_spec=pltpu.PrefetchScalarGridSpec(
            num_scalar_prefetch=0, grid=(nmt, nnt),
            in_specs=in_specs, out_specs=out_specs),
        compiler_params=_cparams("parallel", "parallel"),
    )(*args)
    if Mp != M or Np != N:
        out = out[:M, :N]
    if Np != N:
        stats = stats[:, :, :N]
    return out, stats


@jax.jit
def pallas_matmul_stats(a, b):
    return _matmul_stats(a, b)


@jax.jit
def pallas_bnact_matmul_stats(a, scale, shift, b):
    """conv2 with fused bn1+SiLU prologue: out = SiLU(a*scale+shift) @ b."""
    return _matmul_stats(a, b, scale, shift)


@functools.partial(jax.jit, static_argnames=("act",))
def bn_apply(x2d, scale, shift, residual=None, *, act):
    """y = x*scale + shift (+ residual) (+ SiLU), fused elementwise kernel.
    Math in f32 (v5e has no bf16 VPU/EUP path), bf16 in/out.  C < 128 slabs
    are lane-folded to a multiple-of-128 width (unmasked, dense stores)."""
    M, C = x2d.shape
    f = _lane_fold(M, C)
    Mr, Cf = M // f, C * f
    x = x2d.reshape(Mr, Cf)
    sc = jnp.tile(scale.astype(F32), f)[None, :]
    sh = jnp.tile(shift.astype(F32), f)[None, :]
    tm = _pick_tm(Mr)
    Mp = _rup(Mr, tm)
    if Mp != Mr:
        x = jnp.pad(x, ((0, Mp - Mr), (0, 0)))
    in_specs = [pl.BlockSpec((tm, Cf), lambda i: (i, 0)),
                pl.BlockSpec((1, Cf), lambda i: (0, 0)),
                pl.BlockSpec((1, Cf), lambda i: (0, 0))]
    args = [x, sc, sh]
    if residual is None:
        kernel = functools.partial(_bn_act_kernel, act=act)
    else:
        r = residual.reshape(Mr, Cf)
        if Mp != Mr:
            r = jnp.pad(r, ((0, Mp - Mr), (0, 0)))
        in_specs.append(pl.BlockSpec((tm, Cf), lambda i: (i, 0)))
        args.append(r)
        kernel = functools.partial(_bn_act_res_kernel, act=act)
    out = pl.pallas_call(
        kernel,
        out_shape=jax.ShapeDtypeStruct((Mp, Cf), BF16),
        grid_spec=pltpu.PrefetchScalarGridSpec(
            num_scalar_prefetch=0, grid=(Mp // tm,),
            in_specs=in_specs,
            out_specs=pl.BlockSpec((tm, Cf), lambda i: (i, 0))),
        compiler_params=_cparams("parallel"),
    )(*args)
    if Mp != Mr:
        out = out[:Mr]
    return out.reshape(M, C)


@jax.jit
def pallas_dw_taps(xt, w):
    """Depthwise tap accumulation: xt (T, M, C) shifted-input taps (leading
    tap axis => contiguous per-tap slabs), w (T, C) per-channel tap weights.
    Lane-folds (M, C) -> (M/f, f*C) for C < 128 (dense stores / vregs).
    Returns (out (M, C) bf16, fused per-tile BN-stat partials (nmt, 8, C))."""
    T, M, C = xt.shape
    f = _lane_fold(M, C)
    Mr, Cf = M // f, C * f
    x = xt.astype(BF16).reshape(T, Mr, Cf)
    wt = jnp.tile(w.astype(F32), (1, f))[:, None, :]          # (T, 1, Cf)
    tm = _pick_tm(Mr)
    Mp = _rup(Mr, tm)
    if Mp != Mr:
        x = jnp.pad(x, ((0, 0), (0, Mp - Mr), (0, 0)))
    nmt = Mp // tm
    out, stats = pl.pallas_call(
        _dw_stats_kernel,
        out_shape=(jax.ShapeDtypeStruct((Mp, Cf), BF16),
                   jax.ShapeDtypeStruct((nmt, 8, Cf), F32)),
        grid_spec=pltpu.PrefetchScalarGridSpec(
            num_scalar_prefetch=0, grid=(nmt,),
            in_specs=[pl.BlockSpec((T, tm, Cf), lambda i: (0, i, 0)),
                      pl.BlockSpec((T, 1, Cf), lambda i: (0, 0, 0))],
            out_specs=[pl.BlockSpec((tm, Cf), lambda i: (i, 0)),
                       pl.BlockSpec((1, 8, Cf), lambda i: (i, 0, 0))]),
        compiler_params=_cparams("parallel"),
    )(x, wt)
    if Mp != Mr:
        out = out[:Mr]
    out = out.reshape(M, C)
    stats = stats.reshape(nmt, 8, f, C).sum(axis=2)            # fold to C
    return out, stats


# ---------------------------------------------------------------------------
# BatchNorm finalization (tiny per-channel math, XLA)
# ---------------------------------------------------------------------------
def _bn_scale_shift(stats_list, count, gamma, beta):
    s = sum(jnp.sum(st[:, 0, :], axis=0) for st in stats_list)
    ss = sum(jnp.sum(st[:, 1, :], axis=0) for st in stats_list)
    mean = s / count
    var = jnp.maximum(ss / count - mean * mean, 0.0)
    scale = gamma / jnp.sqrt(var + BN_EPS)
    shift = beta - mean * scale
    return scale, shift


# ---------------------------------------------------------------------------
# Conv wrappers (JAX glue around the Pallas kernels)
# ---------------------------------------------------------------------------
def _im2col_3x3(x):
    """NHWC (B,H,W,C) -> (B*H*W, 9*C) bf16 patch matrix (tap order (dy,dx)).
    TODO(synk): fuse im2col into the conv kernel (manual halo DMA) to cut the
    HBM round trip of the patch matrix at the 56x56/112x112 stages."""
    B, H, W, C = x.shape
    xp = jnp.pad(x, ((0, 0), (1, 1), (1, 1), (0, 0)))
    cols = [xp[:, dy:dy + H, dx:dx + W, :]
            for dy in range(3) for dx in range(3)]
    return jnp.concatenate(cols, axis=-1).reshape(B * H * W, 9 * C)


def _w3x3_to_mat(w_ct):
    """torch ConvTranspose2d weight (Cin,Cout,3,3) -> (9*Cin, Cout) direct-conv
    matrix (spatially flipped kernel) matching _im2col_3x3 tap order."""
    wk = w_ct[:, :, ::-1, ::-1].transpose(2, 3, 0, 1)   # (3,3,Cin,Cout)
    return wk.reshape(-1, w_ct.shape[1])


# sub-pixel phases of ConvTranspose2d(k=3, stride=2, padding=1, output_padding=1)
# (dy, dx) output phase -> taps (ky, kx, ay, ax):
#   out[2a+dy, 2b+dx] += x[a+ay, b+ax] * W[..., ky, kx]
_PHASES = (
    ((0, 0), ((1, 1, 0, 0),)),
    ((0, 1), ((1, 2, 0, 0), (1, 0, 0, 1))),
    ((1, 0), ((2, 1, 0, 0), (0, 1, 1, 0))),
    ((1, 1), ((2, 2, 0, 0), (2, 0, 0, 1), (0, 2, 1, 0), (0, 0, 1, 1))),
)


def _shift_tap(x, ay, ax):
    """x[:, a+ay, b+ax, :] with zero fill past the bottom/right edge."""
    if ay == 0 and ax == 0:
        return x
    return jnp.pad(x[:, ay:, ax:, :], ((0, 0), (0, ay), (0, ax), (0, 0)))


def _pixel_shuffle(y00, y01, y10, y11):
    """Interleave 4 phase outputs (B,H,W,C) -> (B,2H,2W,C).
    TODO(synk): write phase outputs directly interleaved from the kernels."""
    B, H, W, C = y00.shape
    top = jnp.stack([y00, y01], axis=3)        # (B,H,W,2,C)
    bot = jnp.stack([y10, y11], axis=3)
    full = jnp.stack([top, bot], axis=3)       # (B,H,W,2,2,C)
    full = full.transpose(0, 1, 3, 2, 4, 5)    # (B,H,2,W,2,C)
    return full.reshape(B, 2 * H, 2 * W, C)


def conv_t3x3_s1(x, w_ct):
    """ConvTranspose2d(Cin,Cout,3,stride=1,padding=1,bias=False) == direct 3x3
    conv with a flipped kernel.  Returns ((B*H*W, Cout) bf16, stat partials)."""
    pats = _im2col_3x3(x)
    return pallas_matmul_stats(pats, _w3x3_to_mat(w_ct))


def conv_t3x3_s2(x, w_ct):
    """ConvTranspose2d(Cin,Cout,3,stride=2,padding=1,output_padding=1,bias=False)
    via sub-pixel phase decomposition (no zero-dilation).  Returns the
    interleaved (B,2H,2W,Cout) output plus fused per-phase BN-stat partials."""
    B, H, W, Cin = x.shape
    Cout = w_ct.shape[1]
    outs = {}
    stats = []
    for (dy, dx), taps in _PHASES:
        a = jnp.concatenate(
            [_shift_tap(x, ay, ax).reshape(B * H * W, Cin)
             for (_, _, ay, ax) in taps], axis=-1)
        wmat = jnp.concatenate([w_ct[:, :, ky, kx]
                                for (ky, kx, _, _) in taps], axis=0)
        y, st = pallas_matmul_stats(a, wmat)
        outs[(dy, dx)] = y.reshape(B, H, W, Cout)
        stats.append(st)
    y = _pixel_shuffle(outs[(0, 0)], outs[(0, 1)], outs[(1, 0)], outs[(1, 1)])
    return y, stats


def conv_t_dw3x3_s2(x, w_ct):
    """Depthwise ConvTranspose2d(C,C,3,groups=C,stride=2,padding=1,
    output_padding=1,bias=False) via phases.  w_ct: (C,1,3,3).
    TODO(synk): move the tap shifting into the kernel (halo reads) instead of
    stacking shifted copies on the XLA side."""
    B, H, W, C = x.shape
    outs = {}
    stats = []
    for (dy, dx), taps in _PHASES:
        xt = jnp.stack([_shift_tap(x, ay, ax).reshape(B * H * W, C)
                        for (_, _, ay, ax) in taps], axis=0)      # (T, M, C)
        wt = jnp.stack([w_ct[:, 0, ky, kx]
                        for (ky, kx, _, _) in taps], axis=0)      # (T, C)
        y, st = pallas_dw_taps(xt, wt)
        outs[(dy, dx)] = y.reshape(B, H, W, C)
        stats.append(st)
    y = _pixel_shuffle(outs[(0, 0)], outs[(0, 1)], outs[(1, 0)], outs[(1, 1)])
    return y, stats


def conv_t1x1(x2d, w_ct):
    """ConvTranspose2d(Cin, Cout, 1, bias=False) as (B*H*W, Cin) matmul."""
    return pallas_matmul_stats(x2d, w_ct[:, :, 0, 0])


# ---------------------------------------------------------------------------
# InvFusedMBZBlock
# ---------------------------------------------------------------------------
@functools.partial(jax.jit, static_argnames=("stride", "skip_type"))
def _block_fwd(x, arrs, *, stride, skip_type):
    """InvFusedMBZBlock.forward in NHWC/bf16.  (`x - self.se(x)` in the
    reference discards its result, so SE is a no-op and is omitted.)"""
    B, H, W, in_size = x.shape
    out_size = arrs["conv2_w"].shape[1]

    if stride == 1:
        Ho, Wo = H, W
        y1, st1 = conv_t3x3_s1(x, arrs["conv1_w"])
        st1_list = [st1]
    else:
        y1_img, st1_list = conv_t3x3_s2(x, arrs["conv1_w"])
        Ho, Wo = 2 * H, 2 * W
        y1 = y1_img.reshape(B * Ho * Wo, -1)
    Mo = B * Ho * Wo

    # bn1 statistics come from the conv1 epilogue; bn1+SiLU are applied in
    # the *prologue* of the conv2 matmul kernel (no separate HBM pass over h).
    sc1, sh1 = _bn_scale_shift(st1_list, Mo, arrs["bn1_g"], arrs["bn1_b"])
    y2, st2 = pallas_bnact_matmul_stats(y1, sc1, sh1,
                                        arrs["conv2_w"][:, :, 0, 0])

    if skip_type == "id":
        skip2d = x.reshape(Mo, out_size)
    elif skip_type == "pw":              # stride 1, in != out
        s, sst = conv_t1x1(x.reshape(B * H * W, in_size), arrs["skip_w"])
        ssc, ssh = _bn_scale_shift([sst], Mo,
                                   arrs["skip_bn_g"], arrs["skip_bn_b"])
        skip2d = bn_apply(s, ssc, ssh, act=False)
    elif skip_type == "dw":              # stride 2, in == out
        s_img, sst = conv_t_dw3x3_s2(x, arrs["skip_dw_w"])
        ssc, ssh = _bn_scale_shift(sst, Mo,
                                   arrs["skip_bn_g"], arrs["skip_bn_b"])
        skip2d = bn_apply(s_img.reshape(Mo, out_size), ssc, ssh, act=False)
    else:                                # "dw_pw": stride 2, in != out
        s_img, sst = conv_t_dw3x3_s2(x, arrs["skip_dw_w"])
        ssc, ssh = _bn_scale_shift(sst, Mo,
                                   arrs["skip_bn1_g"], arrs["skip_bn1_b"])
        s = bn_apply(s_img.reshape(Mo, in_size), ssc, ssh, act=False)
        s2, sst2 = conv_t1x1(s, arrs["skip_pw_w"])
        # skip_pw bias is an exact no-op in front of training-mode BatchNorm.
        ssc2, ssh2 = _bn_scale_shift([sst2], Mo,
                                     arrs["skip_bn2_g"], arrs["skip_bn2_b"])
        skip2d = bn_apply(s2, ssc2, ssh2, act=False)

    # bn2(conv2(x)) + skip, then SiLU — one fused elementwise kernel
    sc2, sh2 = _bn_scale_shift([st2], Mo, arrs["bn2_g"], arrs["bn2_b"])
    out = bn_apply(y2, sc2, sh2, residual=skip2d, act=True)
    return out.reshape(B, Ho, Wo, out_size)


def inv_fused_mbz_block(x, p):
    arrs = {k: v for k, v in p.items() if isinstance(v, jax.Array)}
    return _block_fwd(x, arrs, stride=p["stride"], skip_type=p["skip_type"])


# ---------------------------------------------------------------------------
# Tiny head / tail layers (negligible FLOPs -> fused XLA ops per review)
# ---------------------------------------------------------------------------
def _silu(x):
    return x * jax.nn.sigmoid(x)


def _bn_train_jnp(x, gamma, beta, axes):
    mean = jnp.mean(x, axis=axes, keepdims=True)
    var = jnp.mean(jnp.square(x - mean), axis=axes, keepdims=True)
    return (x - mean) / jnp.sqrt(var + BN_EPS) * gamma + beta


@jax.jit
def _final_conv_t3x3_s2_c1(x, w_ct):
    """ConvTranspose2d(Cin, 1, 3, stride=2, padding=1, output_padding=1,
    bias=False).  Cout=1 is a degenerate matmul, so it is computed as fused
    XLA multiply-reduces over the sub-pixel phases."""
    outs = {}
    for (dy, dx), taps in _PHASES:
        acc = 0.0
        for (ky, kx, ay, ax) in taps:
            acc = acc + jnp.einsum("bhwc,c->bhw", _shift_tap(x, ay, ax),
                                   w_ct[:, 0, ky, kx])
        outs[(dy, dx)] = acc[..., None]
    return _pixel_shuffle(outs[(0, 0)], outs[(0, 1)], outs[(1, 0)], outs[(1, 1)])


# ---------------------------------------------------------------------------
# Deterministic parameter construction
# ---------------------------------------------------------------------------
def _normal(key, shape, std=0.02):
    # trunc_normal_(std=0.02, a=-2, b=2) truncates ~100 sigma out -> plain normal
    return jax.random.normal(key, shape, dtype=F32) * std


def make_block_params(key, in_size, expand, out_size, stride):
    ks = jax.random.split(key, 4)
    p = {"in_size": in_size, "out_size": out_size, "stride": stride,
         "conv1_w": _normal(ks[0], (in_size, expand, 3, 3)),
         "bn1_g": jnp.ones((expand,), F32),
         "bn1_b": jnp.zeros((expand,), F32),
         "conv2_w": _normal(ks[1], (expand, out_size, 1, 1)),
         "bn2_g": jnp.ones((out_size,), F32),
         "bn2_b": jnp.zeros((out_size,), F32)}
    if stride == 1 and in_size != out_size:
        p["skip_type"] = "pw"
        p["skip_w"] = _normal(ks[2], (in_size, out_size, 1, 1))
        p["skip_bn_g"] = jnp.ones((out_size,), F32)
        p["skip_bn_b"] = jnp.zeros((out_size,), F32)
    elif stride == 2 and in_size == out_size:
        p["skip_type"] = "dw"
        p["skip_dw_w"] = _normal(ks[2], (in_size, 1, 3, 3))
        p["skip_bn_g"] = jnp.ones((out_size,), F32)
        p["skip_bn_b"] = jnp.zeros((out_size,), F32)
    elif stride == 2 and in_size != out_size:
        p["skip_type"] = "dw_pw"
        p["skip_dw_w"] = _normal(ks[2], (in_size, 1, 3, 3))
        p["skip_bn1_g"] = jnp.ones((in_size,), F32)
        p["skip_bn1_b"] = jnp.zeros((in_size,), F32)
        p["skip_pw_w"] = _normal(ks[3], (in_size, out_size, 1, 1))
        p["skip_pw_b"] = jnp.zeros((out_size,), F32)
        p["skip_bn2_g"] = jnp.ones((out_size,), F32)
        p["skip_bn2_b"] = jnp.zeros((out_size,), F32)
    else:
        p["skip_type"] = "id"
    return p


def make_inv_efficientnet_params(key, latent_dim):
    keys = jax.random.split(key, 8)
    params = {
        "linear4_w": _normal(keys[0], (1024, latent_dim)),     # torch (out, in)
        "linear4_b": jnp.zeros((1024,), F32),
        "bn4_g": jnp.ones((1024,), F32), "bn4_b": jnp.zeros((1024,), F32),
        "linear3_w": _normal(keys[1], (256, 1024)),             # bias=False
        "bn3_g": jnp.ones((256,), F32), "bn3_b": jnp.zeros((256,), F32),
        "upscale_w": _normal(keys[2], (256, 1, 7, 7)),
        "upscale_b": jnp.zeros((256,), F32),
        "conv2_w": _normal(keys[3], (256, 256, 1, 1)),
        "conv2_b": jnp.zeros((256,), F32),
        "bn2_g": jnp.ones((256,), F32), "bn2_b": jnp.zeros((256,), F32),
        "conv1_w": _normal(keys[4], (24, 1, 3, 3)),              # final head
    }
    blocks = []
    bkeys = jax.random.split(keys[5], 64)
    bi = 0
    input_channel = 256
    mbconv_cfg = [[4, 128, 6, 2, 1, 64],
                  [6, 160, 9, 1, 1, 128],
                  [6, 256, 15, 2, 1, 160]]
    for cfg in mbconv_cfg[::-1]:
        output_channel = cfg[1]
        expand_size = cfg[5] * cfg[0]
        for i in range(cfg[2]):
            if i == cfg[2] - 1:
                output_channel = cfg[5]
            stride = cfg[3] if i == 0 else 1
            # TODO(synk): InvBtnkBlock undefined in source; substituted with an
            # InvFusedMBZBlock of identical (in, expand, out, stride) args.
            blocks.append(make_block_params(bkeys[bi], input_channel,
                                            expand_size, output_channel,
                                            stride))
            bi += 1
            input_channel = output_channel
    fused_cfg = [[1, 24, 2, 1, 0, 24],
                 [4, 48, 4, 2, 0, 24],
                 [4, 64, 4, 2, 0, 48]]
    for cfg in fused_cfg[::-1]:
        output_channel = cfg[1]
        for i in range(cfg[2]):
            if i == cfg[2] - 1:
                output_channel = cfg[5]
            stride = cfg[3] if i == 0 else 1
            blocks.append(make_block_params(bkeys[bi], input_channel,
                                            input_channel * cfg[0],
                                            output_channel, stride))
            bi += 1
            input_channel = output_channel
    params["blocks"] = blocks
    return params


# ---------------------------------------------------------------------------
# InvEfficientNet forward
# ---------------------------------------------------------------------------
def inv_efficientnet_forward(params, x):
    # ---- tiny latent head: fused XLA (padding a batch-2 M axis to MXU tiles
    #      would be >95% waste); all heavy spatial work below is Pallas ----
    h = x @ params["linear4_w"].T + params["linear4_b"]
    h = _silu(_bn_train_jnp(h, params["bn4_g"], params["bn4_b"], axes=0))
    h = h @ params["linear3_w"].T
    h = _silu(_bn_train_jnp(h, params["bn3_g"], params["bn3_b"], axes=0))
    # depthwise 7x7 transposed conv on a 1x1 spatial input:
    # out[b, ky, kx, c] = h[b, c] * W[c, 0, ky, kx] + bias[c]
    w49 = params["upscale_w"][:, 0].transpose(1, 2, 0)        # (7,7,256)
    up = h[:, None, None, :] * w49[None] + params["upscale_b"]
    # conv2 (1x1, bias) + BN2d + SiLU
    y = up @ params["conv2_w"][:, :, 0, 0] + params["conv2_b"]
    y = _silu(_bn_train_jnp(y, params["bn2_g"], params["bn2_b"],
                            axes=(0, 1, 2)))
    x4 = y.astype(BF16)                                        # (B,7,7,256)

    # ---- inverted MB blocks (spatial 7 -> 14 -> 28 -> 56 -> 112), Pallas ----
    for p in params["blocks"]:
        x4 = inv_fused_mbz_block(x4, p)

    # ---- final ConvTranspose2d(24, 1, 3, stride=2, padding=1, out_pad=1) ----
    out = _final_conv_t3x3_s2_c1(x4.astype(F32), params["conv1_w"])
    return out.transpose(0, 3, 1, 2)                           # NCHW output


if __name__ == "__main__":
    latent_dim = 32
    batch = 2
    key = jax.random.PRNGKey(0)
    pkey, xkey = jax.random.split(key)
    params = make_inv_efficientnet_params(pkey, latent_dim)
    x = jax.random.normal(xkey, (batch, latent_dim), dtype=F32)

    out = inv_efficientnet_forward(params, x)
    out = jax.block_until_ready(out)

    assert out.shape == (batch, 1, 224, 224), out.shape
    assert bool(jnp.all(jnp.isfinite(out))), "non-finite output"
    print("KERNEL_OK")
</pallas_src>

<mosaic_0001>
module attributes {stable_mosaic.version = 11 : i64} {
  func.func @_mm_stats_kernel(%arg0: i32, %arg1: i32, %arg2: memref<104x256xbf16, #tpu.memory_space<vmem>>, %arg3: memref<256x256xbf16, #tpu.memory_space<vmem>>, %arg4: memref<104x256xbf16, #tpu.memory_space<vmem>>, %arg5: memref<1x8x256xf32, #tpu.memory_space<vmem>>) attributes {dimension_semantics = [#tpu.dimension_semantics<parallel>, #tpu.dimension_semantics<parallel>], iteration_bounds = array<i64: 1, 4>, scalar_prefetch = 0 : i64, scratch_operands = 0 : i64, tpu.core_type = #tpu.core_type<tc>, window_params = [{transform_indices = @transform_0, window_bounds = array<i64: 104, 256>}, {transform_indices = @transform_1, window_bounds = array<i64: 256, 256>}, {transform_indices = @transform_2, window_bounds = array<i64: 104, 256>}, {transform_indices = @transform_3, window_bounds = array<i64: 1, 8, 256>}]} {
    %c0 = arith.constant 0 : index
    %c0_0 = arith.constant 0 : index
    %0 = vector.load %arg2[%c0, %c0_0] : memref<104x256xbf16, #tpu.memory_space<vmem>>, vector<104x256xbf16>
    %c0_1 = arith.constant 0 : index
    %c0_2 = arith.constant 0 : index
    %1 = vector.load %arg3[%c0_1, %c0_2] : memref<256x256xbf16, #tpu.memory_space<vmem>>, vector<256x256xbf16>
    %cst = arith.constant dense<0.000000e+00> : vector<104x256xf32>
    %2 = tpu.matmul %0, %1, %cst {dimension_numbers = #tpu.dot_dimension_numbers<[1], [0], [0], [1], [0, 0, 1, 1], [], []>} : vector<104x256xbf16>, vector<256x256xbf16>, vector<104x256xf32> -> vector<104x256xf32>
    %3 = arith.truncf %2 : vector<104x256xf32> to vector<104x256xbf16>
    %c0_3 = arith.constant 0 : index
    %c0_4 = arith.constant 0 : index
    %4 = vector.load %arg4[%c0_3, %c0_4] : memref<104x256xbf16, #tpu.memory_space<vmem>>, vector<104x256xbf16>
    tpu.vector_store %arg4[%c0_3, %c0_4], %3 {strides = array<i32>} : memref<104x256xbf16, #tpu.memory_space<vmem>>, vector<104x256xbf16>,
    %cst_5 = arith.constant dense<0.000000e+00> : vector<256xf32>
    %5 = vector.multi_reduction <add>, %2, %cst_5 [0] : vector<104x256xf32> to vector<256xf32>
    %6 = vector.shape_cast %5 : vector<256xf32> to vector<1x256xf32>
    %7 = arith.mulf %2, %2 : vector<104x256xf32>
    %cst_6 = arith.constant dense<0.000000e+00> : vector<256xf32>
    %8 = vector.multi_reduction <add>, %7, %cst_6 [0] : vector<104x256xf32> to vector<256xf32>
    %9 = vector.shape_cast %8 : vector<256xf32> to vector<1x256xf32>
    %10 = tpu.iota {dimensions = array<i32: 0>} : vector<8x256xi32>
    %c0_i32 = arith.constant 0 : i32
    %11 = vector.broadcast %c0_i32 : i32 to vector<8x256xi32>
    %12 = arith.cmpi eq, %10, %11 : vector<8x256xi32>
    %cst_7 = arith.constant 0.000000e+00 : f32
    %13 = vector.shape_cast %6 : vector<1x256xf32> to vector<1x256xf32>
    %14 = vector.broadcast %13 : vector<1x256xf32> to vector<8x256xf32>
    %15 = vector.broadcast %cst_7 : f32 to vector<8x256xf32>
    %16 = arith.select %12, %14, %15 : vector<8x256xi1>, vector<8x256xf32>
    %c1_i32 = arith.constant 1 : i32
    %17 = vector.broadcast %c1_i32 : i32 to vector<8x256xi32>
    %18 = arith.cmpi eq, %10, %17 : vector<8x256xi32>
    %cst_8 = arith.constant 0.000000e+00 : f32
    %19 = vector.shape_cast %9 : vector<1x256xf32> to vector<1x256xf32>
    %20 = vector.broadcast %19 : vector<1x256xf32> to vector<8x256xf32>
    %21 = vector.broadcast %cst_8 : f32 to vector<8x256xf32>
    %22 = arith.select %18, %20, %21 : vector<8x256xi1>, vector<8x256xf32>
    %23 = arith.addf %16, %22 : vector<8x256xf32>
    %24 = vector.shape_cast %23 : vector<8x256xf32> to vector<1x8x256xf32>
    %c0_9 = arith.constant 0 : index
    %c0_10 = arith.constant 0 : index
    %c0_11 = arith.constant 0 : index
    %25 = vector.load %arg5[%c0_9, %c0_10, %c0_11] : memref<1x8x256xf32, #tpu.memory_space<vmem>>, vector<1x8x256xf32>
    tpu.vector_store %arg5[%c0_9, %c0_10, %c0_11], %24 {strides = array<i32>} : memref<1x8x256xf32, #tpu.memory_space<vmem>>, vector<1x8x256xf32>,
    return
  }
  func.func @transform_0(%arg0: i32, %arg1: i32) -> (i32, i32) {
    %c0_i32 = arith.constant 0 : i32
    %c0_i32_0 = arith.constant 0 : i32
    return %arg0, %c0_i32 : i32, i32
  }
  func.func @transform_1(%arg0: i32, %arg1: i32) -> (i32, i32) {
    %c0_i32 = arith.constant 0 : i32
    %c0_i32_0 = arith.constant 0 : i32
    return %c0_i32, %arg1 : i32, i32
  }
  func.func @transform_2(%arg0: i32, %arg1: i32) -> (i32, i32) {
    %c0_i32 = arith.constant 0 : i32
    return %arg0, %arg1 : i32, i32
  }
  func.func @transform_3(%arg0: i32, %arg1: i32) -> (i32, i32, i32) {
    %c0_i32 = arith.constant 0 : i32
    %c0_i32_0 = arith.constant 0 : i32
    return %arg0, %c0_i32, %arg1 : i32, i32, i32
  }
}

</mosaic_0001>

<bundles_post_ra>
// kernel: pallas_matmul_stats.1
= control target key start
LH: loop header
LB: loop body
LE: loop exit
PB: predicated region body
PF: predicated region fallthrough
CT: control target
= control target key end

     0   :  { %9 = vsyncpa [#allocation3], 0  ;;  %s1837_s0 = inlined_call_operand.hbm [shape: bf16[104,256], index: 0, kind: input, shape index: {}]   ;;  %s1838_s1 = inlined_call_operand.hbm [shape: bf16[256,1024], index: 1, kind: input, shape index: {}]   ;;  %s1839_s2 = inlined_call_operand.hbm [shape: bf16[104,1024], index: 2, kind: output, shape index: {0}]   ;;  %s1840_s3 = inlined_call_operand.hbm [shape: f32[1,8,1024], index: 3, kind: output, shape index: {1}]  }
   0x1   :  { %10 = vsyncpa [#allocation6], 0 }
   0x2   :  { %12 = vsyncpa [#allocation6 + $0x1], 0 }
   0x3   :  { %13 = vsyncpa [#allocation4], 0 }
   0x4   :  { %15 = vsyncpa [#allocation4 + $0x1], 0 }
   0x5   :  { %16 = vsyncpa [#allocation9], 0 }
   0x6   :  { %18 = vsyncpa [#allocation9 + $0x1], 0  ;;  %s1479_s12 = smov 0   ;;  %s1481_s13 = smov 0  }
   0x7   :  { %s1483_s14 = smov 0   ;;  %s1485_s15 = smov 0  }
   0x8   :  { %s1487_s16 = smov 0   ;;  %s1489_s17 = smov 0  }
   0x9 LB: > { %s992_s18 = sadd.s32 4294967295, %s1447_s17   ;;  %s993_s19 = sadd.s32 4294967294, %s1447_s17   ;;  %s1447_s17 = sphi %s1489_s17, %s24_s17   ;;  %s1443_s16 = sphi %s1487_s16, %s1867_s16   ;;  %s1439_s15 = sphi %s1485_s15, %s1866_s15   ;;  %s1435_s14 = sphi %s1483_s14, %s1865_s14   ;;  %s1431_s13 = sphi %s1481_s13, %s1864_s13   ;;  %s1427_s12 = sphi %s1479_s12, %s1863_s12  }
   0xa   : > { %p76_p0 = scmp.ne.s32.totalorder %s1435_s14, %s1431_s13  ;;  %p77_p1 = scmp.eq.s32.totalorder %s1447_s17, 0 }
   0xb   : > { %p82_p2 = scmp.ne.s32.totalorder %s1431_s13, %s1427_s12  ;;  %p1516_p3 = scmp.eq.s32.totalorder %s992_s18, 0 }
   0xc   : > { %p1520_p4 = por %p77_p1, %p76_p0  ;;  %p108_p5 = scmp.eq.s32.totalorder %s992_s18, 3 }
   0xd   : > { %s1848_s20 = scalar_select %p1516_p3, 1, 0 }
   0xe   : > { %p1526_p6 = por %p1516_p3, %p82_p2  ;;  %p114_p7 = scmp.eq.s32.totalorder %s993_s19, 3 }
   0xf   : > { %p1530_p8 = por %p108_p5, %p76_p0  ;;  %p994_p9 = scmp.ge.s32.totalorder %s1447_s17, 1 }
  0x10   : > { %s1850_s22 = scalar_select %p1526_p6, 1, 0 }
  0x11   : > { %s1851_s23 = scalar_select %p1530_p8, 1, 0 }
  0x12   : > { %p1535_p10 = por %p114_p7, %p82_p2  ;;  %p149_p11 = scmp.lt.s32.totalorder %s1447_s17, 5 }
  0x13   : > { %s1449_s26 = smov [#allocation2]   ;;  %p1145_p0 = scmp.lt.s32.totalorder %s1447_s17, 4 }
  0x14   : > { %s1852_s24 = scalar_select %p1535_p10, 1, 0 }
  0x15   : > { %p1540_p12 = pnand %p994_p9, %p149_p11  ;;  %s165_s27 = sshll.u32 %s1449_s26, 4  ;;  %s166_s27 = int_to_ptr.vmem [resolvable:$true] %s165_s27 }
  0x16   : > { %p1555_p2 = pnand %p1145_p0, %p1520_p4  ;;  %s33_s30 = sadd.s32 1, %s1443_s16 }
  0x17   : > { %s1853_s25 = scalar_select %p1540_p12, 1, 0 }
  0x18   : > { %p1129_p13 = pneg %p1540_p12  ;;  %s1271_s6 = scalar_lea.hbm %s1837_s0, 1664 }
  0x19   : > { %s1855_s29 = scalar_select %p1555_p2, 1, 0 }
  0x1a   : > { %p1549_p1 = pnand %p1129_p13, %p1516_p3  ;;  %p1272_p5 = scmp.ne.s32.totalorder %s1837_s0, %s1271_s6 }
  0x1b   : > { %p1278_p4 = scmp.lt.u32.totalorder %s1271_s6, %s1837_s0 }
  0x1c   : > { %p1273_p7 = pneg %p1549_p1 }
  0x1e   : > { %p1274_p9 = pnand %p1273_p7, %p1272_p5 }
  0x20   : > { %p1275_p11 = pneg %p1274_p9 }
  0x22   : > { %p1280_p13 = pnand %p1278_p4, %p1275_p11 }
  0x24   : > { %1283 = shalt.err (!%p1280_p13)
}
  0x25   : > { %s1284_s11 = scalar_lea.vmem %s166_s27, 1664  ;;  %p1292_p6 = scmp.lt.s32.totalorder %s166_s27, %s166_s27 }
  0x26   : > { %p1285_p0 = scmp.ne.s32.totalorder %s166_s27, %s1284_s11  ;;  %p1293_p3 = scmp.lt.s32.totalorder %s1284_s11, %s1284_s11 }
  0x28   : > { %p1287_p10 = pnand %p1285_p0, %p1273_p7  ;;  %p1294_p12 = por %p1293_p3, %p1292_p6 }
  0x2a   : > { %p1288_p8 = pneg %p1287_p10 }
  0x2c   : > { %p1295_p2 = pnand %p1294_p12, %p1288_p8 }
  0x2e   : > { %1298 = shalt.err (!%p1295_p2)
}
  0x2f   : > { %s1847_s18 = smov 128   ;;  %s1451_s19 = smov 8  }
  0x30   : > { %1132 = dma.hbm_to_vmem [thread:$0]  (!%p1549_p1), %s1837_s0, 1664, %s166_s27, [#allocation3], %s1847_s18, %s1847_s18, %s1451_s19  }
  0x31   : > { %p34_p10 = scmp.ge.s32.totalorder %s33_s30, 4  ;;  %s69_s4 = sadd.s32 1, %s1435_s14 }
  0x32   : > { %s179_s5 = sand.u32 1, %s1435_s14   ;;  %s1070_s8 = sshll.u32 %s1443_s16, 7 }
  0x33   : > { %s1869_s30 = smov (%p34_p10, %s33_s30), 0  ;;  %s997_s6 = sshll.u32 %s179_s5, 8 }
  0x34   : > { %s66_s7 = ssub.s32 %s1443_s16, %s1869_s30  ;;  %s1589_s10 = scalar_lea.hbm %s1838_s1, %s1070_s8 }
  0x35   : > { %p67_p3 = scmp.eq.s32.totalorder %s66_s7, 0  ;;  %s183_s27 = scalar_lea.vmem [#allocation5], %s997_s6 }
  0x36   : > { %s190_s11 = sshll.u32 %s183_s27, 4  ;;  %s1596_s26 = scalar_lea.sflag [#allocation6], %s179_s5  ;;  %s1594_s11 = int_to_ptr.vmem [resolvable:$true] %s190_s11 }
  0x37   : > { %s1592_s21 = scalar_select %p67_p3, %s1435_s14, %s69_s4  }
  0x38   : > { %s1299_s18 = scalar_lea.hbm %s1589_s10, 4096  ;;  %p1856_p8 = scmp.ne.s32.totalorder %s1855_s29, 0 }
  0x39   : > { %p1300_p6 = scmp.ne.s32.totalorder %s1589_s10, %s1299_s18  ;;  %s1304_s28 = scalar_lea.hbm %s1838_s1, 16384 }
  0x3a   : > { %p1301_p12 = pneg %p1856_p8  ;;  %p1305_p5 = scmp.lt.u32.totalorder %s1589_s10, %s1838_s1 }
  0x3b   : > { %p1306_p7 = scmp.lt.u32.totalorder %s1304_s28, %s1299_s18  ;;  %p1308_p11 = scmp.lt.u32.totalorder %s1299_s18, %s1589_s10 }
  0x3c   : > { %p1302_p1 = pnand %p1301_p12, %p1300_p6 }
  0x3d   : > { %p1307_p9 = por %p1306_p7, %p1305_p5 }
  0x3e   : > { %p1303_p2 = pneg %p1302_p1 }
  0x3f   : > { %p1309_p4 = por %p1308_p11, %p1307_p9 }
  0x41   : > { %p1310_p13 = pnand %p1309_p4, %p1303_p2 }
  0x43   : > { %1313 = shalt.err (!%p1310_p13)
}
  0x44   : > { %s1314_s4 = scalar_lea.vmem %s1594_s11, 4096  ;;  %s1452_s5 = smov [#allocation5]  }
  0x45   : > { %p1315_p0 = scmp.ne.s32.totalorder %s1594_s11, %s1314_s4  ;;  %s1319_s27 = sshll.u32 %s1452_s5, 4  ;;  %s1320_s27 = int_to_ptr.vmem [resolvable:$false] %s1319_s27 }
  0x46   : > { %s1321_s7 = scalar_lea.vmem %s1320_s27, 8192  ;;  %p1322_p6 = scmp.lt.s32.totalorder %s1594_s11, %s1320_s27 }
  0x47   : > { %p1317_p10 = pnand %p1315_p0, %p1301_p12  ;;  %p1323_p1 = scmp.lt.s32.totalorder %s1321_s7, %s1314_s4 }
  0x49   : > { %p1318_p3 = pneg %p1317_p10  ;;  %p1324_p5 = por %p1323_p1, %p1322_p6 }
  0x4b   : > { %p1325_p7 = pnand %p1324_p5, %p1318_p3 }
  0x4d   : > { %1328 = shalt.err (!%p1325_p7)
}
  0x4e   : > { %s1453_s18 = smov 512   ;;  %s1857_s8 = smov 128  }
  0x4f   : > { %1136 = dma.hbm_to_vmem [thread:$0]  (!%p1856_p8), %s1589_s10, 4096, %s1594_s11, %s1596_s26, %s1453_s18, %s1857_s8, %s1451_s19  }
  0x50   : > { %p1858_p12 = scmp.ne.s32.totalorder %s1853_s25, 0 }
  0x51   : > { %p1859_p2 = scmp.ne.s32.totalorder (!%p1858_p12), %s1848_s20, 0 }
  0x52   : > { %202 = sbr.rel (%p1858_p12) target bundleno = 453 (0x1c5), region = 28 }
  0x59   : > { %1410 = dma.done.wait (%p1859_p2), [#allocation3], 1664  }
  0x5a   : > { %1412 = vsyncadd (%p1859_p2), [#allocation3], 4294965632  ;;  %s1633_s28 = sand.u32 1, %s1431_s13   ;;  %p1860_p8 = scmp.ne.s32.totalorder %s1850_s22, 0 }
  0x5b   : > { %s1002_s29 = sshll.u32 %s1633_s28, 8  ;;  %s209_s6 = scalar_lea.sflag [#allocation6], %s1633_s28 }
  0x5c   : > { %s1637_s9 = scalar_lea.vmem [#allocation5], %s1002_s29 }
  0x5d   : > { %1414 = dma.done.wait (%p1860_p8), %s209_s6, 4096  }
  0x5e   : > { %1416 = vsyncadd (%p1860_p8), %s209_s6, 4294963200  ;;  %v1203_v0 = vld [vmem:[%s1637_s9 + $0x4] ss:$8 sps:$4 sm:$0xff]   ;;  %v1205_v1 = vld [vmem:[%s1637_s9] ss:$8 sps:$4 sm:$0xff]   ;;  %s1118_s20 = smul.u32 104, %s1633_s28 }
  0x5f   : > { %517 = vmatprep.subr.bf16.mxu0 %v1203_v0  ;;  %v1206_v2 = vld [vmem:[%s1637_s9 + $0x14] ss:$8 sps:$4 sm:$0xff]   ;;  %1086 = vmatprep.subr.bf16.mxu1 %v1203_v0  ;;  %v1208_v3 = vld [vmem:[%s1637_s9 + $0x10] ss:$8 sps:$4 sm:$0xff]   ;;  %v1209_v4 = vld [vmem:[%s1637_s9 + $0x24] ss:$8 sps:$4 sm:$0xff]  }
  0x60   : > { %518 = vmatpush1.bf16.msra.mxu0 %v1205_v1  ;;  %1102 = vmatpush1.bf16.msra.mxu1 %v1205_v1  ;;  %v1211_v5 = vld [vmem:[%s1637_s9 + $0x20] ss:$8 sps:$4 sm:$0xff]   ;;  %v1212_v6 = vld [vmem:[%s1637_s9 + $0x34] ss:$8 sps:$4 sm:$0xff]   ;;  %v1214_v7 = vld [vmem:[%s1637_s9 + $0x30] ss:$8 sps:$4 sm:$0xff]  }
  0x61   : > { %519 = vmatprep.subr.bf16.mxu0 %v1206_v2  ;;  %1087 = vmatprep.subr.bf16.mxu1 %v1206_v2  ;;  %v1215_v8 = vld [vmem:[%s1637_s9 + $0x44] ss:$8 sps:$4 sm:$0xff]   ;;  %v1217_v9 = vld [vmem:[%s1637_s9 + $0x40] ss:$8 sps:$4 sm:$0xff]   ;;  %v1218_v10 = vld [vmem:[%s1637_s9 + $0x54] ss:$8 sps:$4 sm:$0xff]  }
  0x62   : > { %v1220_v11 = vld [vmem:[%s1637_s9 + $0x50] ss:$8 sps:$4 sm:$0xff]   ;;  %v1221_v12 = vld [vmem:[%s1637_s9 + $0x64] ss:$8 sps:$4 sm:$0xff]   ;;  %v1223_v14 = vld [vmem:[%s1637_s9 + $0x60] ss:$8 sps:$4 sm:$0xff]  }
  0x63   : > { %v1253_v13 = vld [vmem:[#allocation2 + $0x4] ss:$8 sps:$4 sm:$0xff]   ;;  %v1226_v17 = vld [vmem:[%s1637_s9 + $0x70] ss:$8 sps:$4 sm:$0xff]   ;;  %v1229_v19 = vld [vmem:[%s1637_s9 + $0x80] ss:$8 sps:$4 sm:$0xff]  }
  0x64   : > { %520 = vmatpush1.bf16.msra.mxu0 %v1208_v3  ;;  %1103 = vmatpush1.bf16.msra.mxu1 %v1208_v3  ;;  %v1224_v15 = vld [vmem:[%s1637_s9 + $0x74] ss:$8 sps:$4 sm:$0xff]   ;;  %v1227_v18 = vld [vmem:[%s1637_s9 + $0x84] ss:$8 sps:$4 sm:$0xff]   ;;  %v1232_v21 = vld [vmem:[%s1637_s9 + $0x90] ss:$8 sps:$4 sm:$0xff]  }
  0x65   : > { %521 = vmatprep.subr.bf16.mxu0 %v1209_v4  ;;  %1088 = vmatprep.subr.bf16.mxu1 %v1209_v4  ;;  %v1262_v16 = vld [vmem:[#allocation2 + $0x44] ss:$8 sps:$4 sm:$0xff]   ;;  %v1235_v23 = vld [vmem:[%s1637_s9 + $0xa0] ss:$8 sps:$4 sm:$0xff]   ;;  %v1238_v25 = vld [vmem:[%s1637_s9 + $0xb0] ss:$8 sps:$4 sm:$0xff]  }
  0x66   : > { %549 = vmatprep.mubr.bf16.mxu0 %v1253_v13  ;;  %589 = vmatprep.mubr.bf16.mxu1 %v1262_v16  ;;  %v1230_v20 = vld [vmem:[%s1637_s9 + $0x94] ss:$8 sps:$4 sm:$0xff]   ;;  %v1233_v22 = vld [vmem:[%s1637_s9 + $0xa4] ss:$8 sps:$4 sm:$0xff]   ;;  %v1241_v27 = vld [vmem:[%s1637_s9 + $0xc0] ss:$8 sps:$4 sm:$0xff]  }
  0x67   : > { %v1236_v24 = vld [vmem:[%s1637_s9 + $0xb4] ss:$8 sps:$4 sm:$0xff]   ;;  %v1239_v26 = vld [vmem:[%s1637_s9 + $0xc4] ss:$8 sps:$4 sm:$0xff]   ;;  %v1244_v29 = vld [vmem:[%s1637_s9 + $0xd0] ss:$8 sps:$4 sm:$0xff]  }
  0x68   : > { %522 = vmatpush1.bf16.msra.mxu0 %v1211_v5  ;;  %1104 = vmatpush1.bf16.msra.mxu1 %v1211_v5  ;;  %v1242_v28 = vld [vmem:[%s1637_s9 + $0xd4] ss:$8 sps:$4 sm:$0xff]   ;;  %v1245_v30 = vld [vmem:[%s1637_s9 + $0xe4] ss:$8 sps:$4 sm:$0xff]   ;;  %v1247_v31 = vld [vmem:[%s1637_s9 + $0xe0] ss:$8 sps:$4 sm:$0xff]  }
  0x69   : > { %523 = vmatprep.subr.bf16.mxu0 %v1212_v6  ;;  %1089 = vmatprep.subr.bf16.mxu1 %v1212_v6  ;;  %v1248_v32 = vld [vmem:[%s1637_s9 + $0xf4] ss:$8 sps:$4 sm:$0xff]   ;;  %v1250_v33 = vld [vmem:[%s1637_s9 + $0xf0] ss:$8 sps:$4 sm:$0xff]   ;;  %s1686_s22 = scalar_lea.vmem [#allocation7], %s1118_s20  ;;  %s1084_s25 = sshll.u32 %s1439_s15, 7 }
  0x6a   : > { %v1251_v34 = vld [vmem:[#allocation2] ss:$8 sps:$4 sm:$0xff]   ;;  %v1254_v36 = vld [vmem:[#allocation2 + $0x14] ss:$8 sps:$4 sm:$0xff]   ;;  %v1256_v39 = vld [vmem:[#allocation2 + $0x10] ss:$8 sps:$4 sm:$0xff]   ;;  %s1724_s26 = scalar_lea.hbm %s1839_s2, %s1084_s25 }
  0x6b   : > { %v1260_v35 = vld [vmem:[#allocation2 + $0x40] ss:$8 sps:$4 sm:$0xff]   ;;  %v1266_v37 = vld [vmem:[#allocation2 + $0x54] ss:$8 sps:$4 sm:$0xff]   ;;  %v1268_v40 = vld [vmem:[#allocation2 + $0x50] ss:$8 sps:$4 sm:$0xff]  }
  0x6c   : > { %524 = vmatpush1.bf16.msra.mxu0 %v1214_v7  ;;  %1105 = vmatpush1.bf16.msra.mxu1 %v1214_v7  ;;  %v257_v38 = vld [vmem:[#allocation2 + $0x60] sm:$0xff]  ;;  %v1263_v45 = vld [vmem:[#allocation2 + $0x34] ss:$8 sps:$4 sm:$0xff]   ;;  %v1265_v46 = vld [vmem:[#allocation2 + $0x30] ss:$8 sps:$4 sm:$0xff]   ;;  %s843_s19 = sshll.u32 %s1686_s22, 4  ;;  %s1726_s19 = int_to_ptr.vmem [resolvable:$true] %s843_s19 }
  0x6d   : > { %525 = vmatprep.subr.bf16.mxu0 %v1215_v8  ;;  %1090 = vmatprep.subr.bf16.mxu1 %v1215_v8  ;;  %v1257_v41 = vld [vmem:[#allocation2 + $0x24] ss:$8 sps:$4 sm:$0xff]   ;;  %v1017_v42 = vcombine.high %v257_v38, %v257_v38  ;;  %v1259_v43 = vld [vmem:[#allocation2 + $0x20] ss:$8 sps:$4 sm:$0xff]   ;;  %v1016_v44 = vcombine.low %v257_v38, %v257_v38  ;;  %s822_s4 = scalar_lea.sflag [#allocation4], %s1633_s28  ;;  %s1329_s5 = scalar_lea.vmem %s1726_s19, 1664 }
  0x6e   : > { %p1330_p9 = scmp.ne.s32.totalorder %s1726_s19, %s1329_s5  ;;  %p1861_p11 = scmp.ne.s32.totalorder %s1851_s23, 0 }
  0x6f   : > { %s1454_s27 = smov [#allocation7]  }
  0x70   : > { %526 = vmatpush1.bf16.msra.mxu0 %v1217_v9  ;;  %1106 = vmatpush1.bf16.msra.mxu1 %v1217_v9  ;;  %p1331_p4 = pnand %p1330_p9, %p1861_p11  ;;  %s1333_s7 = sshll.u32 %s1454_s27, 4  ;;  %s1334_s7 = int_to_ptr.vmem [resolvable:$false] %s1333_s7 }
  0x71   : > { %527 = vmatprep.subr.bf16.mxu0 %v1218_v10  ;;  %1091 = vmatprep.subr.bf16.mxu1 %v1218_v10  ;;  %s1335_s18 = scalar_lea.vmem %s1334_s7, 3328  ;;  %p1336_p0 = scmp.lt.s32.totalorder %s1726_s19, %s1334_s7 }
  0x72   : > { %p1332_p13 = pneg %p1331_p4  ;;  %p1337_p10 = scmp.lt.s32.totalorder %s1335_s18, %s1329_s5 }
  0x74   : > { %528 = vmatpush1.bf16.msra.mxu0 %v1220_v11  ;;  %1107 = vmatpush1.bf16.msra.mxu1 %v1220_v11  ;;  %p1338_p3 = por %p1337_p10, %p1336_p0 }
  0x75   : > { %529 = vmatprep.subr.bf16.mxu0 %v1221_v12  ;;  %1092 = vmatprep.subr.bf16.mxu1 %v1221_v12 }
  0x76   : > { %p1339_p6 = pnand %p1338_p3, %p1332_p13 }
  0x78   : > { %530 = vmatpush1.bf16.msra.mxu0 %v1223_v14  ;;  %1108 = vmatpush1.bf16.msra.mxu1 %v1223_v14 }
  0x79   : > { %531 = vmatprep.subr.bf16.mxu0 %v1224_v15  ;;  %1093 = vmatprep.subr.bf16.mxu1 %v1224_v15 }
  0x7c   : > { %532 = vmatpush1.bf16.msra.mxu0 %v1226_v17  ;;  %1109 = vmatpush1.bf16.msra.mxu1 %v1226_v17 }
  0x7d   : > { %533 = vmatprep.subr.bf16.mxu0 %v1227_v18  ;;  %1094 = vmatprep.subr.bf16.mxu1 %v1227_v18 }
  0x80   : > { %534 = vmatpush1.bf16.msra.mxu0 %v1229_v19  ;;  %1110 = vmatpush1.bf16.msra.mxu1 %v1229_v19 }
  0x81   : > { %535 = vmatprep.subr.bf16.mxu0 %v1230_v20  ;;  %1095 = vmatprep.subr.bf16.mxu1 %v1230_v20 }
  0x84   : > { %536 = vmatpush1.bf16.msra.mxu0 %v1232_v21  ;;  %1111 = vmatpush1.bf16.msra.mxu1 %v1232_v21 }
  0x85   : > { %537 = vmatprep.subr.bf16.mxu0 %v1233_v22  ;;  %1096 = vmatprep.subr.bf16.mxu1 %v1233_v22 }
  0x88   : > { %538 = vmatpush1.bf16.msra.mxu0 %v1235_v23  ;;  %1112 = vmatpush1.bf16.msra.mxu1 %v1235_v23 }
  0x89   : > { %539 = vmatprep.subr.bf16.mxu0 %v1236_v24  ;;  %1097 = vmatprep.subr.bf16.mxu1 %v1236_v24 }
  0x8c   : > { %540 = vmatpush1.bf16.msra.mxu0 %v1238_v25  ;;  %1113 = vmatpush1.bf16.msra.mxu1 %v1238_v25 }
  0x8d   : > { %541 = vmatprep.subr.bf16.mxu0 %v1239_v26  ;;  %1098 = vmatprep.subr.bf16.mxu1 %v1239_v26 }
  0x90   : > { %542 = vmatpush1.bf16.msra.mxu0 %v1241_v27  ;;  %1114 = vmatpush1.bf16.msra.mxu1 %v1241_v27 }
  0x91   : > { %543 = vmatprep.subr.bf16.mxu0 %v1242_v28  ;;  %1099 = vmatprep.subr.bf16.mxu1 %v1242_v28 }
  0x94   : > { %544 = vmatpush1.bf16.msra.mxu0 %v1244_v29  ;;  %1115 = vmatpush1.bf16.msra.mxu1 %v1244_v29 }
  0x95   : > { %545 = vmatprep.subr.bf16.mxu0 %v1245_v30  ;;  %1100 = vmatprep.subr.bf16.mxu1 %v1245_v30 }
  0x98   : > { %546 = vmatpush1.bf16.msra.mxu0 %v1247_v31  ;;  %1116 = vmatpush1.bf16.msra.mxu1 %v1247_v31 }
  0x99   : > { %547 = vmatprep.subr.bf16.mxu0 %v1248_v32  ;;  %1101 = vmatprep.subr.bf16.mxu1 %v1248_v32 }
  0x9c   : > { %548 = vmatpush1.bf16.msra.mxu0 %v1250_v33  ;;  %1117 = vmatpush1.bf16.msra.mxu1 %v1250_v33 }
  0x9f   : > { %550 = vmatmul.mubr.bf16.vlgmr.msra.gmra.mrb[0].mxu0 %v1251_v34  ;;  %590 = vmatmul.mubr.bf16.vlgmr.msra.gmra.mrb[0].mxu1 %v1260_v35 }
  0xa0   : > { %559 = vmatprep.mubr.bf16.mxu0 %v1254_v36  ;;  %599 = vmatprep.mubr.bf16.mxu1 %v1266_v37 }
  0xa7   : > { %560 = vmatmul.mubr.bf16.gmra.mrb[4].mxu0 %v1256_v39  ;;  %600 = vmatmul.mubr.bf16.gmra.mrb[4].mxu1 %v1268_v40 }
  0xa8   : > { %569 = vmatprep.mubr.bf16.mxu0 %v1257_v41  ;;  %609 = vmatprep.mubr.bf16.mxu1 %v1017_v42 }
  0xaf   : > { %570 = vmatmul.mubr.bf16.gmra.mrb[8].mxu0 %v1259_v43  ;;  %610 = vmatmul.mubr.bf16.gmra.mrb[8].mxu1 %v1016_v44 }
  0xb0   : > { %579 = vmatprep.mubr.bf16.mxu0 %v1263_v45 }
  0xb7   : > { %580 = vmatmul.mubr.bf16.gmra.mrb[12].mxu0 %v1265_v46 }
 0x172   : > { %v551_v47 = vpop.f32.mrb[0].mxu0  ;;  %v1676_v48 = vpop.f32.mrb[0].mxu1 }
 0x173   : > { %v553_v49 = vpop.f32.mrb[1].mxu0  ;;  %v1678_v50 = vpop.f32.mrb[1].mxu1  ;;  %v747_v55 = vmul.f32 %v551_v47, %v551_v47 }
 0x174   : > { %v1071_v51 = vpack.c.bf16 %v553_v49, %v551_v47  ;;  %v555_v52 = vpop.f32.mrb[2].mxu0  ;;  %v1079_v53 = vpack.c.bf16 %v1678_v50, %v1676_v48  ;;  %v1682_v54 = vpop.f32.mrb[2].mxu1  ;;  %v748_v56 = vmul.f32 %v553_v49, %v553_v49 }
 0x175   : > { %v711_v57 = vadd.f32 %v555_v52, %v551_v47  ;;  %v749_v58 = vmul.f32 %v555_v52, %v555_v52  ;;  %v557_v59 = vpop.f32.mrb[3].mxu0  ;;  %v1684_v60 = vpop.f32.mrb[3].mxu1 }
 0x176   : > { %698 = vst [vmem:[%s1686_s22] sm:$0xff] %v1071_v51  ;;  %v1072_v61 = vpack.c.bf16 %v557_v59, %v555_v52  ;;  %v729_v62 = vadd.f32 %v557_v59, %v553_v49  ;;  %v750_v63 = vmul.f32 %v557_v59, %v557_v59  ;;  %706 = vst [vmem:[%s1686_s22 + $0x40] sm:$0xff] %v1079_v53 }
 0x177   : > { %v1080_v0 = vpack.c.bf16 %v1684_v60, %v1682_v54  ;;  %v773_v1 = vadd.f32 %v749_v58, %v747_v55 }
 0x178   : > { %699 = vst [vmem:[%s1686_s22 + $0x8] sm:$0xff] %v1072_v61  ;;  %v791_v2 = vadd.f32 %v750_v63, %v748_v56 }
 0x179   : > { %707 = vst [vmem:[%s1686_s22 + $0x48] sm:$0xff] %v1080_v0 }
 0x17a   : > { %v561_v3 = vpop.f32.mrb[4].mxu0  ;;  %v1694_v4 = vpop.f32.mrb[4].mxu1 }
 0x17b   : > { %v712_v5 = vadd.f32 %v711_v57, %v561_v3  ;;  %v751_v6 = vmul.f32 %v561_v3, %v561_v3  ;;  %v563_v7 = vpop.f32.mrb[5].mxu0  ;;  %v1696_v8 = vpop.f32.mrb[5].mxu1 }
 0x17c   : > { %v1073_v9 = vpack.c.bf16 %v563_v7, %v561_v3  ;;  %v730_v10 = vadd.f32 %v729_v62, %v563_v7  ;;  %v752_v11 = vmul.f32 %v563_v7, %v563_v7  ;;  %v565_v12 = vpop.f32.mrb[6].mxu0  ;;  %v1081_v13 = vpack.c.bf16 %v1696_v8, %v1694_v4  ;;  %v1700_v14 = vpop.f32.mrb[6].mxu1 }
 0x17d   : > { %v774_v15 = vadd.f32 %v773_v1, %v751_v6  ;;  %v713_v16 = vadd.f32 %v712_v5, %v565_v12  ;;  %v753_v17 = vmul.f32 %v565_v12, %v565_v12  ;;  %v567_v18 = vpop.f32.mrb[7].mxu0  ;;  %v1702_v19 = vpop.f32.mrb[7].mxu1  ;;  %v763_v7 = vmul.f32 %v1676_v48, %v1676_v48 }
 0x17e   : > { %700 = vst [vmem:[%s1686_s22 + $0x10] sm:$0xff] %v1073_v9  ;;  %v792_v20 = vadd.f32 %v791_v2, %v752_v11  ;;  %v1074_v21 = vpack.c.bf16 %v567_v18, %v565_v12  ;;  %v731_v22 = vadd.f32 %v730_v10, %v567_v18  ;;  %v754_v23 = vmul.f32 %v567_v18, %v567_v18 }
 0x17f   : > { %708 = vst [vmem:[%s1686_s22 + $0x50] sm:$0xff] %v1081_v13  ;;  %v775_v24 = vadd.f32 %v774_v15, %v753_v17  ;;  %v1082_v25 = vpack.c.bf16 %v1702_v19, %v1700_v14  ;;  %v764_v11 = vmul.f32 %v1678_v50, %v1678_v50  ;;  %v765_v15 = vmul.f32 %v1682_v54, %v1682_v54 }
 0x180   : > { %701 = vst [vmem:[%s1686_s22 + $0x18] sm:$0xff] %v1074_v21  ;;  %v793_v26 = vadd.f32 %v792_v20, %v754_v23 }
 0x181   : > { %709 = vst [vmem:[%s1686_s22 + $0x58] sm:$0xff] %v1082_v25 }
 0x182   : > { %v571_v27 = vpop.f32.mrb[8].mxu0  ;;  %v1710_v28 = vpop.f32.mrb[8].mxu1 }
 0x183   : > { %v714_v29 = vadd.f32 %v713_v16, %v571_v27  ;;  %v755_v30 = vmul.f32 %v571_v27, %v571_v27  ;;  %v573_v31 = vpop.f32.mrb[9].mxu0  ;;  %v1712_v32 = vpop.f32.mrb[9].mxu1 }
 0x184   : > { %v1075_v33 = vpack.c.bf16 %v573_v31, %v571_v27  ;;  %v732_v34 = vadd.f32 %v731_v22, %v573_v31  ;;  %v756_v35 = vmul.f32 %v573_v31, %v573_v31  ;;  %v575_v36 = vpop.f32.mrb[10].mxu0  ;;  %v1083_v37 = vpack.c.bf16 %v1712_v32, %v1710_v28  ;;  %v615_v38 = vpop.f32.mrb[10].mxu1 }
 0x185   : > { %v776_v39 = vadd.f32 %v775_v24, %v755_v30  ;;  %v715_v40 = vadd.f32 %v714_v29, %v575_v36  ;;  %v757_v41 = vmul.f32 %v575_v36, %v575_v36  ;;  %v577_v42 = vpop.f32.mrb[11].mxu0  ;;  %v616_v43 = vpop.f32.mrb[11].mxu1 }
 0x186   : > { %702 = vst [vmem:[%s1686_s22 + $0x20] sm:$0xff] %v1075_v33  ;;  %v794_v44 = vadd.f32 %v793_v26, %v756_v35  ;;  %v1076_v45 = vpack.c.bf16 %v577_v42, %v575_v36  ;;  %v733_v46 = vadd.f32 %v732_v34, %v577_v42  ;;  %v758_v47 = vmul.f32 %v577_v42, %v577_v42 }
 0x187   : > { %710 = vst [vmem:[%s1686_s22 + $0x60] sm:$0xff] %v1083_v37  ;;  %v777_v49 = vadd.f32 %v776_v39, %v757_v41 }
 0x188   : > { %703 = vst [vmem:[%s1686_s22 + $0x28] sm:$0xff] %v1076_v45  ;;  %v795_v51 = vadd.f32 %v794_v44, %v758_v47 }
 0x18a   : > { %v581_v52 = vpop.f32.mrb[12].mxu0 }
 0x18b   : > { %v716_v53 = vadd.f32 %v715_v40, %v581_v52  ;;  %v759_v55 = vmul.f32 %v581_v52, %v581_v52  ;;  %v583_v56 = vpop.f32.mrb[13].mxu0 }
 0x18c   : > { %v1077_v57 = vpack.c.bf16 %v583_v56, %v581_v52  ;;  %v734_v58 = vadd.f32 %v733_v46, %v583_v56  ;;  %v760_v59 = vmul.f32 %v583_v56, %v583_v56  ;;  %v585_v61 = vpop.f32.mrb[14].mxu0 }
 0x18d   : > { %v778_v62 = vadd.f32 %v777_v49, %v759_v55  ;;  %v717_v63 = vadd.f32 %v716_v53, %v585_v61  ;;  %v761_v0 = vmul.f32 %v585_v61, %v585_v61  ;;  %v587_v1 = vpop.f32.mrb[15].mxu0 }
 0x18e   : > { %704 = vst [vmem:[%s1686_s22 + $0x30] sm:$0xff] %v1077_v57  ;;  %v796_v2 = vadd.f32 %v795_v51, %v760_v59  ;;  %v1078_v3 = vpack.c.bf16 %v587_v1, %v585_v61  ;;  %v735_v5 = vadd.f32 %v734_v58, %v587_v1  ;;  %v762_v6 = vmul.f32 %v587_v1, %v587_v1 }
 0x18f   : > { %v718_v9 = vadd.f32 %v717_v63, %v1676_v48  ;;  %v779_v10 = vadd.f32 %v778_v62, %v761_v0 }
 0x190   : > { %705 = vst [vmem:[%s1686_s22 + $0x38] sm:$0xff] %v1078_v3  ;;  %v736_v12 = vadd.f32 %v735_v5, %v1678_v50  ;;  %v797_v13 = vadd.f32 %v796_v2, %v762_v6 }
 0x191   : > { %v780_v16 = vadd.f32 %v779_v10, %v763_v7  ;;  %v719_v17 = vadd.f32 %v718_v9, %v1682_v54 }
 0x192   : > { %1342 = shalt.err (!%p1339_p6)
}
 0x193   : > { %s1343_s8 = scalar_lea.hbm %s1724_s26, 1664  ;;  %s1347_s9 = scalar_lea.hbm %s1839_s2, 6656 }
 0x194   : > { %p1344_p1 = scmp.ne.s32.totalorder %s1724_s26, %s1343_s8  ;;  %p1348_p12 = scmp.lt.u32.totalorder %s1724_s26, %s1839_s2 }
 0x195   : > { %p1349_p2 = scmp.lt.u32.totalorder %s1347_s9, %s1343_s8  ;;  %p1351_p9 = scmp.lt.u32.totalorder %s1343_s8, %s1724_s26 }
 0x196   : > { %p1345_p5 = pnand %p1344_p1, %p1861_p11 }
 0x197   : > { %p1350_p8 = por %p1349_p2, %p1348_p12 }
 0x198   : > { %p1346_p7 = pneg %p1345_p5 }
 0x199   : > { %p1352_p4 = por %p1351_p9, %p1350_p8 }
 0x19b   : > { %p1353_p13 = pnand %p1352_p4, %p1346_p7 }
 0x19d   : > { %1356 = shalt.err (!%p1353_p13)
}
 0x19e   : > { %s1455_s25 = smov 128   ;;  %s1456_s10 = smov 512   ;;  %v766_v48 = vmul.f32 %v1684_v60, %v1684_v60  ;;  %v737_v50 = vadd.f32 %v736_v12, %v1684_v60  ;;  %v798_v54 = vadd.f32 %v797_v13, %v764_v11  ;;  %v767_v18 = vmul.f32 %v1694_v4, %v1694_v4 }
 0x19f   : > { %s1457_s11 = smov 8   ;;  %v720_v20 = vadd.f32 %v719_v17, %v1694_v4  ;;  %v781_v21 = vadd.f32 %v780_v16, %v765_v15  ;;  %v768_v22 = vmul.f32 %v1696_v8, %v1696_v8  ;;  %v769_v26 = vmul.f32 %v1700_v14, %v1700_v14  ;;  %s1458_s29 = smov [#allocation8]  }
 0x1a0   : > { %1125 = dma.vmem_to_hbm [thread:$0]  (%p1861_p11), %s1726_s19, 1664, %s1724_s26, %s822_s4, %s1455_s25, %s1456_s10, %s1457_s11   ;;  %v799_v23 = vadd.f32 %v798_v54, %v766_v48  ;;  %v738_v24 = vadd.f32 %v737_v50, %v1696_v8  ;;  %v771_v60 = vmul.f32 %v1710_v28, %v1710_v28  ;;  %v770_v4 = vmul.f32 %v1702_v19, %v1702_v19 }
 0x1a1   : > { %v721_v25 = vadd.f32 %v720_v20, %v1700_v14  ;;  %v782_v27 = vadd.f32 %v781_v21, %v767_v18  ;;  %v772_v31 = vmul.f32 %v1712_v32, %v1712_v32  ;;  %v809_v41 = vlaneseq  ;;  %s1003_s19 = sshll.u32 %s1633_s28, 4  ;;  %s1085_s26 = sshll.u32 %s1439_s15, 8 }
 0x1a2   : > { %v739_v29 = vadd.f32 %v738_v24, %v1702_v19  ;;  %v800_v30 = vadd.f32 %v799_v23, %v768_v22  ;;  %s239_s4 = scalar_lea.vmem [#allocation8], %s1003_s19  ;;  %s1789_s18 = scalar_lea.hbm %s1840_s3, %s1085_s26 }
 0x1a3   : > { %v783_v33 = vadd.f32 %v782_v27, %v769_v26  ;;  %v722_v8 = vadd.f32 %v721_v25, %v1710_v28  ;;  %v810_v28 = vshrl.u32 %v809_v41, 7  ;;  %s862_s5 = sshll.u32 %s239_s4, 4  ;;  %s827_s15 = scalar_lea.sflag [#allocation9], %s1633_s28  ;;  %s1791_s5 = int_to_ptr.vmem [resolvable:$true] %s862_s5 }
 0x1a4   : > { %v801_v34 = vadd.f32 %v800_v30, %v770_v4  ;;  %v740_v35 = vadd.f32 %v739_v29, %v1712_v32  ;;  %s1357_s8 = scalar_lea.vmem %s1791_s5, 256  ;;  %s1361_s6 = sshll.u32 %s1458_s29, 4  ;;  %s1362_s6 = int_to_ptr.vmem [resolvable:$false] %s1361_s6 }
 0x1a5   : > { %v723_v14 = vrot.slane %v722_v8, 4  ;;  %v784_v36 = vadd.f32 %v783_v33, %v771_v60  ;;  %vm811_vm0 = vcmp.eq.s32.totalorder %v810_v28, 0  ;;  %vm814_vm1 = vcmp.eq.s32.totalorder %v810_v28, 1  ;;  %p1358_p0 = scmp.ne.s32.totalorder %s1791_s5, %s1357_s8  ;;  %s1363_s9 = scalar_lea.vmem %s1362_s6, 512 }
 0x1a6   : > { %v741_v37 = vrot.slane %v740_v35, 4  ;;  %v802_v38 = vadd.f32 %v801_v34, %v772_v31  ;;  %p1364_p6 = scmp.lt.s32.totalorder %s1791_s5, %s1362_s6  ;;  %p1365_p1 = scmp.lt.s32.totalorder %s1363_s9, %s1357_s8 }
 0x1a7   : > { %v724_v39 = vadd.f32 %v723_v14, %v722_v8  ;;  %v785_v40 = vrot.slane %v784_v36, 4  ;;  %p1359_p10 = pnand %p1358_p0, %p1861_p11 }
 0x1a8   : > { %v742_v42 = vadd.f32 %v741_v37, %v740_v35  ;;  %v803_v19 = vrot.slane %v802_v38, 4  ;;  %p1366_p5 = por %p1365_p1, %p1364_p6 }
 0x1a9   : > { %v725_v43 = vrot.slane %v724_v39, 2  ;;  %v786_v44 = vadd.f32 %v785_v40, %v784_v36  ;;  %p1360_p3 = pneg %p1359_p10 }
 0x1aa   : > { %v743_v45 = vrot.slane %v742_v42, 2  ;;  %v804_v46 = vadd.f32 %v803_v19, %v802_v38 }
 0x1ab   : > { %v726_v47 = vadd.f32 %v725_v43, %v724_v39  ;;  %v787_v49 = vrot.slane %v786_v44, 2  ;;  %p1367_p7 = pnand %p1366_p5, %p1360_p3 }
 0x1ac   : > { %v744_v51 = vadd.f32 %v743_v45, %v742_v42  ;;  %v805_v32 = vrot.slane %v804_v46, 2 }
 0x1ad   : > { %v727_v52 = vrot.slane %v726_v47, 1  ;;  %v788_v53 = vadd.f32 %v787_v49, %v786_v44 }
 0x1ae   : > { %v745_v55 = vrot.slane %v744_v51, 1  ;;  %v806_v56 = vadd.f32 %v805_v32, %v804_v46 }
 0x1af   : > { %v728_v57 = vadd.f32 %v727_v52, %v726_v47  ;;  %v789_v58 = vrot.slane %v788_v53, 1 }
 0x1b0   : > { %v746_v59 = vadd.f32 %v745_v55, %v744_v51  ;;  %v807_v61 = vrot.slane %v806_v56, 1 }
 0x1b1   : > { %v790_v62 = vadd.f32 %v789_v58, %v788_v53  ;;  %v812_v0 = vsel %vm811_vm0, %v728_v57, 0.0 }
 0x1b2   : > { %v808_v63 = vadd.f32 %v807_v61, %v806_v56  ;;  %v813_v3 = vsel %vm811_vm0, %v746_v59, 0.0 }
 0x1b3   : > { %v815_v1 = vsel %vm814_vm1, %v790_v62, 0.0 }
 0x1b4   : > { %v817_v2 = vadd.f32 %v815_v1, %v812_v0  ;;  %v816_v5 = vsel %vm814_vm1, %v808_v63, 0.0 }
 0x1b5   : > { %v818_v6 = vadd.f32 %v816_v5, %v813_v3 }
 0x1b6   : > { %819 = vst [vmem:[%s239_s4] sm:$0xff] %v817_v2 }
 0x1b7   : > { %820 = vst [vmem:[%s239_s4 + $0x8] sm:$0xff] %v818_v6 }
 0x1b8   : > { %1370 = shalt.err (!%p1367_p7)
}
 0x1b9   : > { %s1371_s28 = scalar_lea.hbm %s1789_s18, 256  ;;  %s1375_s25 = scalar_lea.hbm %s1840_s3, 1024 }
 0x1ba   : > { %p1372_p12 = scmp.ne.s32.totalorder %s1789_s18, %s1371_s28  ;;  %p1376_p9 = scmp.lt.u32.totalorder %s1789_s18, %s1840_s3 }
 0x1bb   : > { %p1377_p4 = scmp.lt.u32.totalorder %s1375_s25, %s1371_s28  ;;  %p1379_p0 = scmp.lt.u32.totalorder %s1371_s28, %s1789_s18 }
 0x1bc   : > { %p1373_p2 = pnand %p1372_p12, %p1861_p11 }
 0x1bd   : > { %p1378_p13 = por %p1377_p4, %p1376_p9 }
 0x1be   : > { %p1374_p8 = pneg %p1373_p2 }
 0x1bf   : > { %p1380_p10 = por %p1379_p0, %p1378_p13 }
 0x1c1   : > { %p1381_p3 = pnand %p1380_p10, %p1374_p8 }
 0x1c3   : > { %1384 = shalt.err (!%p1381_p3)
}
 0x1c4   : > { %1126 = dma.vmem_to_hbm [thread:$0]  (%p1861_p11), %s1791_s5, 256, %s1789_s18, %s827_s15  }
 0x1c5 PF: > { %p1147_p6 = scmp.ge.s32.totalorder %s1447_s17, 2  ;;  %s874_s19 = sand.u32 1, %s1427_s12  }
 0x1c6   : > { %p1862_p1 = scmp.ne.s32.totalorder %s1852_s24, 0  ;;  %s875_s26 = scalar_lea.sflag [#allocation4], %s874_s19 }
 0x1c8   : > { %p1138_p5 = pnand %p1147_p6, %p1862_p1 }
 0x1ca   : > { %1418 = dma.done.wait (!%p1138_p5), %s875_s26, 1664  }
 0x1cb   : > { %1420 = vsyncadd (!%p1138_p5), %s875_s26, 4294965632  ;;  %s884_s4 = scalar_lea.sflag [#allocation9], %s874_s19 }
 0x1cc   : > { %1422 = dma.done.wait (!%p1138_p5), %s884_s4, 256  }
 0x1cd   : > { %1424 = vsyncadd (!%p1138_p5), %s884_s4, 4294967040  ;;  %s24_s17 = sadd.s32 1, %s1447_s17   ;;  %s1863_s12 = smov %s1431_s13 }
 0x1ce   : > { %p21_p7 = scmp.ge.s32.totalorder %s24_s17, 6   ;;  %s1864_s13 = smov %s1435_s14 }
 0x1cf   : > { %s1865_s14 = smov %s1592_s21  ;;  %s1866_s15 = smov %s1443_s16 }
 0x1d0   : > { %s1867_s16 = smov %s1869_s30  ;;  %23 = sbr.rel (!%p21_p7) target bundleno = 9 (0x9), region = 96 }
 0x1d7   :  { %889 = vsyncpa [#allocation3], 1 }
 0x1d8   :  { %891 = vsyncpa [#allocation3 + $0x1], 1 }
 0x1d9   :  { %892 = vsyncpa [#allocation6], 1 }
 0x1da   :  { %894 = vsyncpa [#allocation6 + $0x1], 1 }
 0x1db   :  { %895 = vsyncpa [#allocation4], 1 }
 0x1dc   :  { %897 = vsyncpa [#allocation4 + $0x1], 1 }
 0x1dd   :  { %898 = vsyncpa [#allocation9], 1 }
 0x1de   :  { %900 = vsyncpa [#allocation9 + $0x1], 1 }

</bundles_post_ra>
